<compile_context>
chip_gen: v7x
topology: tpu7x:2x2x1
jax: 0.10.0
libtpu: 0.0.40
codegen_flags: <defaults>
</compile_context>

<pallas_src>
import functools
import math

import jax
import jax.numpy as jnp
from jax.experimental import pallas as pl
from jax.experimental.pallas import tpu as pltpu

_ACC_ROWS = 8  # f32 sublane granularity for the partial-sum accumulators


def _binary_iou_kernel(p_ref, t_ref, num_out, sum_out, num_acc, sum_acc, *,
                       total_rows, block_rows, needs_mask):
    i = pl.program_id(0)
    last = pl.num_programs(0) - 1
    cols = p_ref.shape[-1]

    @pl.when(i == 0)
    def _():
        num_acc[...] = jnp.zeros_like(num_acc)
        sum_acc[...] = jnp.zeros_like(sum_acc)

    def accumulate(masked):
        # Native-dtype load, in-kernel upcast + clamp(0, 1).
        p = jnp.clip(p_ref[...].astype(jnp.float32), 0.0, 1.0)
        t = jnp.clip(t_ref[...].astype(jnp.float32), 0.0, 1.0)
        if masked:  # static: only emitted for the ragged last block
            row = jax.lax.broadcasted_iota(jnp.int32, p.shape, 0) + i * block_rows
            valid = row < total_rows
            p = jnp.where(valid, p, 0.0)
            t = jnp.where(valid, t, 0.0)
        pt = p * t
        s = p + t
        # Tile-aligned partial reduction along the row axis: (block_rows, cols)
        # -> (block_rows/8, 8, cols), sum over the leading axis = pure vreg adds.
        num_acc[...] += pt.reshape(-1, _ACC_ROWS, cols).sum(axis=0)
        sum_acc[...] += s.reshape(-1, _ACC_ROWS, cols).sum(axis=0)

    if needs_mask:
        # Mask cost (~5 VALU ops / vreg) is paid on the last step only.
        @pl.when(i < last)
        def _():
            accumulate(False)

        @pl.when(i == last)
        def _():
            accumulate(True)
    else:
        accumulate(False)

    @pl.when(i == last)
    def _():
        num_out[0, 0] = jnp.sum(num_acc[...])
        sum_out[0, 0] = jnp.sum(sum_acc[...])


def binary_iou_loss(predict, target, smooth=1.0, reduction="mean"):
    """Pallas implementation of BinaryIoU.forward.

    predict, target: arrays of shape [N, *] (same shape).  The PyTorch module
    reduces with a global torch.sum, so the loss is a 0-d scalar and
    'mean' / 'sum' / 'none' all return that same scalar (docstring caveat:
    this matches the reference module, not conventional per-sample 'none').
    """
    assert predict.shape[0] == target.shape[0], "predict & target batch size don't match"
    assert predict.shape == target.shape, "predict & target shapes don't match"

    e = math.prod(predict.shape)
    p_flat = predict.reshape(-1)
    t_flat = target.reshape(-1)

    # Lane-dense column count that divides the element count (no pad needed).
    cols = None
    for c in (1024, 512, 256, 128):
        if e >= c and e % c == 0:
            cols = c
            break

    tail_num = jnp.float32(0.0)
    tail_sum = jnp.float32(0.0)
    if cols is None:
        cols = 128
        main = (e // cols) * cols
        if main == 0:
            # Tiny input (< 128 elements): pad to one 128-lane row. The copy is
            # negligible and clamp(0)=0 contributes 0 to both sums (exact).
            pad = cols - e
            p_flat = jnp.pad(p_flat, (0, pad))
            t_flat = jnp.pad(t_flat, (0, pad))
            main = cols
        else:
            # Sub-128-element tail folded in on the wrapper side (no full-array
            # jnp.pad copy through HBM).
            p_tail = jnp.clip(p_flat[main:].astype(jnp.float32), 0.0, 1.0)
            t_tail = jnp.clip(t_flat[main:].astype(jnp.float32), 0.0, 1.0)
            tail_num = jnp.sum(p_tail * t_tail)
            tail_sum = jnp.sum(p_tail + t_tail)
            p_flat = p_flat[:main]
            t_flat = t_flat[:main]
    else:
        main = e

    rows = main // cols
    p2 = p_flat.reshape(rows, cols)
    t2 = t_flat.reshape(rows, cols)

    # Sublane granularity for the block's row dim: 8 for 4-byte dtypes,
    # 16 for bf16, 32 for int8 (take the stricter of the two inputs).
    sub = max(8, 32 // p2.dtype.itemsize, 32 // t2.dtype.itemsize)

    # ~512K elements per operand per block (f32: 2 MiB; x2 inputs x2 pipeline
    # buffers = 8 MiB), safe under every chip's scoped-VMEM default.
    target_elems = 512 * 1024
    block_rows = max(sub, ((target_elems // cols) // sub) * sub)
    # Never allocate more rows than the sub-rounded array extent.
    block_rows = min(block_rows, pl.cdiv(rows, sub) * sub)

    grid_steps = pl.cdiv(rows, block_rows)
    needs_mask = (rows % block_rows) != 0

    in_bytes = p2.size * p2.dtype.itemsize + t2.size * t2.dtype.itemsize
    cost = pl.CostEstimate(flops=6 * main, transcendentals=0,
                           bytes_accessed=in_bytes + 8)

    kernel = functools.partial(
        _binary_iou_kernel,
        total_rows=rows,
        block_rows=block_rows,
        needs_mask=needs_mask,
    )

    num_arr, sum_arr = pl.pallas_call(
        kernel,
        out_shape=(
            jax.ShapeDtypeStruct((1, 1), jnp.float32),
            jax.ShapeDtypeStruct((1, 1), jnp.float32),
        ),
        grid_spec=pltpu.PrefetchScalarGridSpec(
            num_scalar_prefetch=0,
            grid=(grid_steps,),
            in_specs=[
                pl.BlockSpec((block_rows, cols), lambda i: (i, 0)),
                pl.BlockSpec((block_rows, cols), lambda i: (i, 0)),
            ],
            out_specs=(
                pl.BlockSpec((1, 1), lambda i: (0, 0),
                             memory_space=pltpu.MemorySpace.SMEM),
                pl.BlockSpec((1, 1), lambda i: (0, 0),
                             memory_space=pltpu.MemorySpace.SMEM),
            ),
            scratch_shapes=[
                pltpu.VMEM((_ACC_ROWS, cols), jnp.float32),
                pltpu.VMEM((_ACC_ROWS, cols), jnp.float32),
            ],
        ),
        compiler_params=pltpu.CompilerParams(
            dimension_semantics=("arbitrary",),
        ),
        cost_estimate=cost,
    )(p2, t2)

    num = num_arr[0, 0] + tail_num
    total = sum_arr[0, 0] + tail_sum        # sum(p + t)
    den = total - num                       # sum(p + t - p*t)
    loss = 1.0 - num / (den + jnp.float32(smooth))

    if reduction in ("mean", "sum", "none"):
        # Loss is already a global scalar, so mean/sum/none all return it.
        return loss
    raise Exception("Unexpected reduction {}".format(reduction))


def _reference(predict, target, smooth=1.0):
    n = predict.shape[0]
    p = jnp.clip(predict.reshape(n, -1).astype(jnp.float32), 0.0, 1.0)
    t = jnp.clip(target.reshape(n, -1).astype(jnp.float32), 0.0, 1.0)
    num = jnp.sum(p * t)
    den = jnp.sum(p + t - p * t)
    return 1.0 - num / (den + smooth)


if __name__ == "__main__":
    key = jax.random.PRNGKey(0)
    k1, k2 = jax.random.split(key)
    # [N, C, H, W] like the PyTorch module's NCHW inputs.
    predict = jax.nn.sigmoid(jax.random.normal(k1, (2, 4, 16, 16), dtype=jnp.float32))
    target = (jax.random.uniform(k2, (2, 4, 16, 16)) > 0.5).astype(jnp.float32)

    loss = binary_iou_loss(predict, target, smooth=1.0, reduction="mean")
    loss = jax.block_until_ready(loss)

    ref = _reference(predict, target, smooth=1.0)
    assert jnp.allclose(loss, ref, atol=1e-5, rtol=1e-5), (loss, ref)
    print("KERNEL_OK")
</pallas_src>

<mosaic_0001>
module attributes {stable_mosaic.version = 11 : i64} {
  func.func @_binary_iou_kernel(%arg0: i32, %arg1: memref<8x1024xf32, #tpu.memory_space<vmem>>, %arg2: memref<8x1024xf32, #tpu.memory_space<vmem>>, %arg3: memref<1x1xf32, #tpu.memory_space<smem>>, %arg4: memref<1x1xf32, #tpu.memory_space<smem>>, %arg5: memref<8x1024xf32, #tpu.memory_space<vmem>>, %arg6: memref<8x1024xf32, #tpu.memory_space<vmem>>) attributes {dimension_semantics = [#tpu.dimension_semantics<arbitrary>], iteration_bounds = array<i64: 1>, scalar_prefetch = 0 : i64, scratch_operands = 2 : i64, tpu.core_type = #tpu.core_type<tc>, window_params = [{transform_indices = @transform_0, window_bounds = array<i64: 8, 1024>}, {transform_indices = @transform_1, window_bounds = array<i64: 8, 1024>}, {transform_indices = @transform_2, window_bounds = array<i64: 1, 1>}, {transform_indices = @transform_3, window_bounds = array<i64: 1, 1>}]} {
    %c0_i32 = arith.constant 0 : i32
    %0 = arith.cmpi eq, %arg0, %c0_i32 : i32
    %1 = arith.extui %0 : i1 to i32
    %c0_i32_0 = arith.constant 0 : i32
    %2 = arith.cmpi ne, %1, %c0_i32_0 : i32
    scf.if %2 {
      %cst = arith.constant 0.000000e+00 : f32
      %12 = vector.broadcast %cst : f32 to vector<8x1024xf32>
      %c0 = arith.constant 0 : index
      %c0_7 = arith.constant 0 : index
      %13 = vector.load %arg5[%c0, %c0_7] : memref<8x1024xf32, #tpu.memory_space<vmem>>, vector<8x1024xf32>
      tpu.vector_store %arg5[%c0, %c0_7], %12 {strides = array<i32>} : memref<8x1024xf32, #tpu.memory_space<vmem>>, vector<8x1024xf32>,
      %cst_8 = arith.constant 0.000000e+00 : f32
      %14 = vector.broadcast %cst_8 : f32 to vector<8x1024xf32>
      %c0_9 = arith.constant 0 : index
      %c0_10 = arith.constant 0 : index
      %15 = vector.load %arg6[%c0_9, %c0_10] : memref<8x1024xf32, #tpu.memory_space<vmem>>, vector<8x1024xf32>
      tpu.vector_store %arg6[%c0_9, %c0_10], %14 {strides = array<i32>} : memref<8x1024xf32, #tpu.memory_space<vmem>>, vector<8x1024xf32>,
    } else {
    }
    %c0_i32_1 = arith.constant 0 : i32
    %3 = arith.cmpi slt, %arg0, %c0_i32_1 : i32
    %4 = arith.extui %3 : i1 to i32
    %c0_i32_2 = arith.constant 0 : i32
    %5 = arith.cmpi ne, %4, %c0_i32_2 : i32
    scf.if %5 {
      %c0 = arith.constant 0 : index
      %c0_7 = arith.constant 0 : index
      %12 = vector.load %arg1[%c0, %c0_7] : memref<8x1024xf32, #tpu.memory_space<vmem>>, vector<8x1024xf32>
      %cst = arith.constant 0.000000e+00 : f32
      %cst_8 = arith.constant 1.000000e+00 : f32
      %13 = vector.broadcast %cst : f32 to vector<8x1024xf32>
      %14 = arith.maximumf %13, %12 : vector<8x1024xf32>
      %15 = vector.broadcast %cst_8 : f32 to vector<8x1024xf32>
      %16 = arith.minimumf %15, %14 : vector<8x1024xf32>
      %c0_9 = arith.constant 0 : index
      %c0_10 = arith.constant 0 : index
      %17 = vector.load %arg2[%c0_9, %c0_10] : memref<8x1024xf32, #tpu.memory_space<vmem>>, vector<8x1024xf32>
      %cst_11 = arith.constant 0.000000e+00 : f32
      %cst_12 = arith.constant 1.000000e+00 : f32
      %18 = vector.broadcast %cst_11 : f32 to vector<8x1024xf32>
      %19 = arith.maximumf %18, %17 : vector<8x1024xf32>
      %20 = vector.broadcast %cst_12 : f32 to vector<8x1024xf32>
      %21 = arith.minimumf %20, %19 : vector<8x1024xf32>
      %22 = arith.mulf %16, %21 : vector<8x1024xf32>
      %23 = arith.addf %16, %21 : vector<8x1024xf32>
      %c0_13 = arith.constant 0 : index
      %c0_14 = arith.constant 0 : index
      %24 = vector.load %arg5[%c0_13, %c0_14] : memref<8x1024xf32, #tpu.memory_space<vmem>>, vector<8x1024xf32>
      %25 = vector.shape_cast %22 : vector<8x1024xf32> to vector<1x8x1024xf32>
      %cst_15 = arith.constant dense<0.000000e+00> : vector<8x1024xf32>
      %26 = vector.multi_reduction <add>, %25, %cst_15 [0] : vector<1x8x1024xf32> to vector<8x1024xf32>
      %27 = arith.addf %24, %26 : vector<8x1024xf32>
      %c0_16 = arith.constant 0 : index
      %c0_17 = arith.constant 0 : index
      %28 = vector.load %arg5[%c0_16, %c0_17] : memref<8x1024xf32, #tpu.memory_space<vmem>>, vector<8x1024xf32>
      tpu.vector_store %arg5[%c0_16, %c0_17], %27 {strides = array<i32>} : memref<8x1024xf32, #tpu.memory_space<vmem>>, vector<8x1024xf32>,
      %c0_18 = arith.constant 0 : index
      %c0_19 = arith.constant 0 : index
      %29 = vector.load %arg6[%c0_18, %c0_19] : memref<8x1024xf32, #tpu.memory_space<vmem>>, vector<8x1024xf32>
      %30 = vector.shape_cast %23 : vector<8x1024xf32> to vector<1x8x1024xf32>
      %cst_20 = arith.constant dense<0.000000e+00> : vector<8x1024xf32>
      %31 = vector.multi_reduction <add>, %30, %cst_20 [0] : vector<1x8x1024xf32> to vector<8x1024xf32>
      %32 = arith.addf %29, %31 : vector<8x1024xf32>
      %c0_21 = arith.constant 0 : index
      %c0_22 = arith.constant 0 : index
      %33 = vector.load %arg6[%c0_21, %c0_22] : memref<8x1024xf32, #tpu.memory_space<vmem>>, vector<8x1024xf32>
      tpu.vector_store %arg6[%c0_21, %c0_22], %32 {strides = array<i32>} : memref<8x1024xf32, #tpu.memory_space<vmem>>, vector<8x1024xf32>,
    } else {
    }
    %c0_i32_3 = arith.constant 0 : i32
    %6 = arith.cmpi eq, %arg0, %c0_i32_3 : i32
    %7 = arith.extui %6 : i1 to i32
    %c0_i32_4 = arith.constant 0 : i32
    %8 = arith.cmpi ne, %7, %c0_i32_4 : i32
    scf.if %8 {
      %c0 = arith.constant 0 : index
      %c0_7 = arith.constant 0 : index
      %12 = vector.load %arg1[%c0, %c0_7] : memref<8x1024xf32, #tpu.memory_space<vmem>>, vector<8x1024xf32>
      %cst = arith.constant 0.000000e+00 : f32
      %cst_8 = arith.constant 1.000000e+00 : f32
      %13 = vector.broadcast %cst : f32 to vector<8x1024xf32>
      %14 = arith.maximumf %13, %12 : vector<8x1024xf32>
      %15 = vector.broadcast %cst_8 : f32 to vector<8x1024xf32>
      %16 = arith.minimumf %15, %14 : vector<8x1024xf32>
      %c0_9 = arith.constant 0 : index
      %c0_10 = arith.constant 0 : index
      %17 = vector.load %arg2[%c0_9, %c0_10] : memref<8x1024xf32, #tpu.memory_space<vmem>>, vector<8x1024xf32>
      %cst_11 = arith.constant 0.000000e+00 : f32
      %cst_12 = arith.constant 1.000000e+00 : f32
      %18 = vector.broadcast %cst_11 : f32 to vector<8x1024xf32>
      %19 = arith.maximumf %18, %17 : vector<8x1024xf32>
      %20 = vector.broadcast %cst_12 : f32 to vector<8x1024xf32>
      %21 = arith.minimumf %20, %19 : vector<8x1024xf32>
      %22 = tpu.iota {dimensions = array<i32: 0>} : vector<8x1024xi32>
      %c8_i32 = arith.constant 8 : i32
      %23 = arith.muli %arg0, %c8_i32 : i32
      %24 = vector.broadcast %23 : i32 to vector<8x1024xi32>
      %25 = arith.addi %22, %24 : vector<8x1024xi32>
      %c2_i32 = arith.constant 2 : i32
      %26 = vector.broadcast %c2_i32 : i32 to vector<8x1024xi32>
      %27 = arith.cmpi slt, %25, %26 : vector<8x1024xi32>
      %cst_13 = arith.constant 0.000000e+00 : f32
      %28 = vector.broadcast %cst_13 : f32 to vector<8x1024xf32>
      %29 = arith.select %27, %16, %28 : vector<8x1024xi1>, vector<8x1024xf32>
      %cst_14 = arith.constant 0.000000e+00 : f32
      %30 = vector.broadcast %cst_14 : f32 to vector<8x1024xf32>
      %31 = arith.select %27, %21, %30 : vector<8x1024xi1>, vector<8x1024xf32>
      %32 = arith.mulf %29, %31 : vector<8x1024xf32>
      %33 = arith.addf %29, %31 : vector<8x1024xf32>
      %c0_15 = arith.constant 0 : index
      %c0_16 = arith.constant 0 : index
      %34 = vector.load %arg5[%c0_15, %c0_16] : memref<8x1024xf32, #tpu.memory_space<vmem>>, vector<8x1024xf32>
      %35 = vector.shape_cast %32 : vector<8x1024xf32> to vector<1x8x1024xf32>
      %cst_17 = arith.constant dense<0.000000e+00> : vector<8x1024xf32>
      %36 = vector.multi_reduction <add>, %35, %cst_17 [0] : vector<1x8x1024xf32> to vector<8x1024xf32>
      %37 = arith.addf %34, %36 : vector<8x1024xf32>
      %c0_18 = arith.constant 0 : index
      %c0_19 = arith.constant 0 : index
      %38 = vector.load %arg5[%c0_18, %c0_19] : memref<8x1024xf32, #tpu.memory_space<vmem>>, vector<8x1024xf32>
      tpu.vector_store %arg5[%c0_18, %c0_19], %37 {strides = array<i32>} : memref<8x1024xf32, #tpu.memory_space<vmem>>, vector<8x1024xf32>,
      %c0_20 = arith.constant 0 : index
      %c0_21 = arith.constant 0 : index
      %39 = vector.load %arg6[%c0_20, %c0_21] : memref<8x1024xf32, #tpu.memory_space<vmem>>, vector<8x1024xf32>
      %40 = vector.shape_cast %33 : vector<8x1024xf32> to vector<1x8x1024xf32>
      %cst_22 = arith.constant dense<0.000000e+00> : vector<8x1024xf32>
      %41 = vector.multi_reduction <add>, %40, %cst_22 [0] : vector<1x8x1024xf32> to vector<8x1024xf32>
      %42 = arith.addf %39, %41 : vector<8x1024xf32>
      %c0_23 = arith.constant 0 : index
      %c0_24 = arith.constant 0 : index
      %43 = vector.load %arg6[%c0_23, %c0_24] : memref<8x1024xf32, #tpu.memory_space<vmem>>, vector<8x1024xf32>
      tpu.vector_store %arg6[%c0_23, %c0_24], %42 {strides = array<i32>} : memref<8x1024xf32, #tpu.memory_space<vmem>>, vector<8x1024xf32>,
    } else {
    }
    %c0_i32_5 = arith.constant 0 : i32
    %9 = arith.cmpi eq, %arg0, %c0_i32_5 : i32
    %10 = arith.extui %9 : i1 to i32
    %c0_i32_6 = arith.constant 0 : i32
    %11 = arith.cmpi ne, %10, %c0_i32_6 : i32
    scf.if %11 {
      %c0 = arith.constant 0 : index
      %c0_7 = arith.constant 0 : index
      %12 = vector.load %arg5[%c0, %c0_7] : memref<8x1024xf32, #tpu.memory_space<vmem>>, vector<8x1024xf32>
      %13 = vector.shape_cast %12 : vector<8x1024xf32> to vector<1x8x1024xf32>
      %cst = arith.constant dense<0.000000e+00> : vector<1xf32>
      %14 = vector.multi_reduction <add>, %13, %cst [1, 2] : vector<1x8x1024xf32> to vector<1xf32>
      %15 = vector.shape_cast %14 : vector<1xf32> to vector<1x1x1xf32>
      %16 = vector.extract %15[0, 0, 0] : f32 from vector<1x1x1xf32>
      %c0_8 = arith.constant 0 : index
      %c0_9 = arith.constant 0 : index
      %17 = memref.load %arg3[%c0_8, %c0_9] : memref<1x1xf32, #tpu.memory_space<smem>>
      memref.store %16, %arg3[%c0_8, %c0_9] : memref<1x1xf32, #tpu.memory_space<smem>>
      %c0_10 = arith.constant 0 : index
      %c0_11 = arith.constant 0 : index
      %18 = vector.load %arg6[%c0_10, %c0_11] : memref<8x1024xf32, #tpu.memory_space<vmem>>, vector<8x1024xf32>
      %19 = vector.shape_cast %18 : vector<8x1024xf32> to vector<1x8x1024xf32>
      %cst_12 = arith.constant dense<0.000000e+00> : vector<1xf32>
      %20 = vector.multi_reduction <add>, %19, %cst_12 [1, 2] : vector<1x8x1024xf32> to vector<1xf32>
      %21 = vector.shape_cast %20 : vector<1xf32> to vector<1x1x1xf32>
      %22 = vector.extract %21[0, 0, 0] : f32 from vector<1x1x1xf32>
      %c0_13 = arith.constant 0 : index
      %c0_14 = arith.constant 0 : index
      %23 = memref.load %arg4[%c0_13, %c0_14] : memref<1x1xf32, #tpu.memory_space<smem>>
      memref.store %22, %arg4[%c0_13, %c0_14] : memref<1x1xf32, #tpu.memory_space<smem>>
    } else {
    }
    return
  }
  func.func @transform_0(%arg0: i32) -> (i32, i32) {
    %c0_i32 = arith.constant 0 : i32
    %c0_i32_0 = arith.constant 0 : i32
    return %arg0, %c0_i32 : i32, i32
  }
  func.func @transform_1(%arg0: i32) -> (i32, i32) {
    %c0_i32 = arith.constant 0 : i32
    %c0_i32_0 = arith.constant 0 : i32
    return %arg0, %c0_i32 : i32, i32
  }
  func.func @transform_2(%arg0: i32) -> (i32, i32) {
    %c0_i32 = arith.constant 0 : i32
    %c0_i32_0 = arith.constant 0 : i32
    %c0_i32_1 = arith.constant 0 : i32
    return %c0_i32, %c0_i32_0 : i32, i32
  }
  func.func @transform_3(%arg0: i32) -> (i32, i32) {
    %c0_i32 = arith.constant 0 : i32
    %c0_i32_0 = arith.constant 0 : i32
    %c0_i32_1 = arith.constant 0 : i32
    return %c0_i32, %c0_i32_0 : i32, i32
  }
}

</mosaic_0001>

<bundles_post_ra>
// kernel: tpu_custom_call.1
= control target key start
LH: loop header
LB: loop body
LE: loop exit
PB: predicated region body
PF: predicated region fallthrough
CT: control target
= control target key end

     0   :  { %9 = vsyncpa [#allocation5], 0  ;;  %s977_s0 = inlined_call_operand.hbm [shape: f32[2,1024], index: 0, kind: input, shape index: {}]   ;;  %s978_s1 = inlined_call_operand.hbm [shape: f32[2,1024], index: 1, kind: input, shape index: {}]   ;;  %s979_s2 = inlined_call_operand.hbm [shape: f32[1,1], index: 2, kind: output, shape index: {0}]   ;;  %s980_s3 = inlined_call_operand.hbm [shape: f32[1,1], index: 3, kind: output, shape index: {1}]  }
   0x1   :  { %10 = vsyncpa [#allocation8], 0 }
   0x2   :  { %11 = vsyncpa [#allocation6], 0 }
   0x3   :  { %12 = vsyncpa [#allocation11], 0 }
   0x4   :  { %17 = vsyncadd [#allocation5], 768  ;;  %s862_s12 = smov [#allocation4]   ;;  %s790_s16 = scalar_lea.hbm %s977_s0, 256 }
   0x5   :  { %s18_s13 = sshll.u32 %s862_s12, 4  ;;  %p791_p0 = scmp.ne.s32.totalorder %s977_s0, %s790_s16  ;;  %s19_s13 = int_to_ptr.vmem [resolvable:$true] %s18_s13 }
   0x6   :  { %p794_p1 = scmp.lt.u32.totalorder %s790_s16, %s977_s0 }
   0x8   :  { %p796_p2 = pnand %p794_p1, %p791_p0 }
   0xa   :  { %799 = shalt.err (!%p796_p2)
}
   0xb   :  { %s800_s21 = scalar_lea.vmem %s19_s13, 256  ;;  %s804_s22 = scalar_lea.vmem %s19_s13, 1024 }
   0xc   :  { %p801_p3 = scmp.ne.s32.totalorder %s19_s13, %s800_s21  ;;  %p805_p4 = scmp.lt.s32.totalorder %s19_s13, %s19_s13 }
   0xd   :  { %p806_p5 = scmp.lt.s32.totalorder %s804_s22, %s800_s21 }
   0xf   :  { %p807_p6 = por %p806_p5, %p805_p4 }
  0x11   :  { %p808_p7 = pnand %p807_p6, %p801_p3 }
  0x13   :  { %811 = shalt.err (!%p808_p7)
}
  0x14   :  { %s863_s23 = smov 256   ;;  %s864_s24 = smov 16  }
  0x15   :  { %24 = dma.hbm_to_vmem [thread:$0]  %s977_s0, 256, %s19_s13, [#allocation5], %s863_s23, %s863_s23, %s864_s24  }
  0x16   :  { %29 = vsyncadd [#allocation8], 768  ;;  %s865_s27 = smov [#allocation7]   ;;  %s812_s4 = scalar_lea.hbm %s978_s1, 256 }
  0x17   :  { %s30_s28 = sshll.u32 %s865_s27, 4  ;;  %p813_p8 = scmp.ne.s32.totalorder %s978_s1, %s812_s4  ;;  %s31_s28 = int_to_ptr.vmem [resolvable:$true] %s30_s28 }
  0x18   :  { %p816_p9 = scmp.lt.u32.totalorder %s812_s4, %s978_s1 }
  0x1a   :  { %p818_p10 = pnand %p816_p9, %p813_p8 }
  0x1c   :  { %821 = shalt.err (!%p818_p10)
}
  0x1d   :  { %s822_s9 = scalar_lea.vmem %s31_s28, 256  ;;  %s826_s0 = scalar_lea.vmem %s31_s28, 1024 }
  0x1e   :  { %p823_p11 = scmp.ne.s32.totalorder %s31_s28, %s822_s9  ;;  %p827_p12 = scmp.lt.s32.totalorder %s31_s28, %s31_s28 }
  0x1f   :  { %p828_p13 = scmp.lt.s32.totalorder %s826_s0, %s822_s9 }
  0x21   :  { %p829_p0 = por %p828_p13, %p827_p12 }
  0x23   :  { %p830_p1 = pnand %p829_p0, %p823_p11 }
  0x25   :  { %833 = shalt.err (!%p830_p1)
}
  0x26   :  { %36 = dma.hbm_to_vmem [thread:$0]  %s978_s1, 256, %s31_s28, [#allocation8], %s863_s23, %s863_s23, %s864_s24  }
  0x27   :  { %854 = dma.done.wait [#allocation5], 1024  }
  0x28   :  { %855 = vsyncadd [#allocation5], 4294966272 }
  0x29   :  { %856 = dma.done.wait [#allocation8], 1024  }
  0x2a   :  { %857 = vsyncadd [#allocation8], 4294966272  ;;  %v374_v0 = vld [vmem:[#allocation4] sm:$0xff]  ;;  %v375_v1 = vld [vmem:[#allocation4 + $0x8] sm:$0xff]  ;;  %v422_v3 = vlaneseq  ;;  %v866_v4 = vmov 1983009808  }
  0x2b   :  { %v376_v2 = vld [vmem:[#allocation4 + $0x10] sm:$0xff]  ;;  %v441_v5 = vunpack.c.l.s4 %v866_v4  ;;  %v377_v6 = vld [vmem:[#allocation4 + $0x18] sm:$0xff]  ;;  %v378_v7 = vld [vmem:[#allocation4 + $0x20] sm:$0xff]  ;;  %v382_v9 = vmax.f32 %v374_v0, 0.0  ;;  %v383_v10 = vmax.f32 %v375_v1, 0.0  ;;  %s834_s14 = scalar_lea.hbm %s979_s2, 16 }
  0x2c   :  { %v379_v8 = vld [vmem:[#allocation4 + $0x28] sm:$0xff]  ;;  %v384_v11 = vmax.f32 %v376_v2, 0.0  ;;  %v380_v12 = vld [vmem:[#allocation4 + $0x30] sm:$0xff]  ;;  %v381_v13 = vld [vmem:[#allocation4 + $0x38] sm:$0xff]  ;;  %v385_v14 = vmax.f32 %v377_v6, 0.0  ;;  %v386_v15 = vmax.f32 %v378_v7, 0.0  ;;  %p835_p2 = scmp.ne.s32.totalorder %s979_s2, %s834_s14  ;;  %p838_p3 = scmp.lt.u32.totalorder %s834_s14, %s979_s2 }
  0x2d   :  { %v398_v16 = vld [vmem:[#allocation7] sm:$0xff]  ;;  %v387_v17 = vmax.f32 %v379_v8, 0.0  ;;  %v388_v18 = vmax.f32 %v380_v12, 0.0  ;;  %v389_v19 = vmax.f32 %v381_v13, 0.0  ;;  %v400_v20 = vld [vmem:[#allocation7 + $0x10] sm:$0xff]  ;;  %v913_v21 = vshrl.u32 %v422_v3, 7 }
  0x2e   :  { %v442_v22 = vunpack.c.0.s8 %v441_v5  ;;  %v390_v23 = vmin.f32 %v382_v9, 1.0  ;;  %v391_v24 = vmin.f32 %v383_v10, 1.0  ;;  %v392_v25 = vmin.f32 %v384_v11, 1.0  ;;  %v399_v26 = vld [vmem:[#allocation7 + $0x8] sm:$0xff]  ;;  %v402_v27 = vld [vmem:[#allocation7 + $0x20] sm:$0xff]  ;;  %v404_v32 = vld [vmem:[#allocation7 + $0x30] sm:$0xff]  ;;  %p840_p4 = pnand %p838_p3, %p835_p2 }
  0x2f   :  { %v406_v28 = vmax.f32 %v398_v16, 0.0  ;;  %v393_v29 = vmin.f32 %v385_v14, 1.0  ;;  %v394_v30 = vmin.f32 %v386_v15, 1.0  ;;  %v396_v31 = vmin.f32 %v388_v18, 1.0  ;;  %v401_v36 = vld [vmem:[#allocation7 + $0x18] sm:$0xff]  ;;  %v403_v37 = vld [vmem:[#allocation7 + $0x28] sm:$0xff] }
  0x30   :  { %v408_v33 = vmax.f32 %v400_v20, 0.0  ;;  %v395_v34 = vmin.f32 %v387_v17, 1.0  ;;  %v397_v35 = vmin.f32 %v389_v19, 1.0  ;;  %v405_v38 = vld [vmem:[#allocation7 + $0x38] sm:$0xff]  ;;  %v407_v39 = vmax.f32 %v399_v26, 0.0 }
  0x31   :  { %v410_v40 = vmax.f32 %v402_v27, 0.0  ;;  %v445_v41 = vsub.s32 %v442_v22, %v913_v21  ;;  %v412_v42 = vmax.f32 %v404_v32, 0.0  ;;  %v414_v43 = vmin.f32 %v406_v28, 1.0 }
  0x32   :  { %v416_v44 = vmin.f32 %v408_v33, 1.0  ;;  %v436_v45 = vcombine.low %v390_v23, %v392_v25  ;;  %v437_v46 = vcombine.high %v390_v23, %v392_v25  ;;  %v438_v47 = vcombine.low %v394_v30, %v396_v31 }
  0x33   :  { %v439_v48 = vcombine.high %v394_v30, %v396_v31  ;;  %v472_v49 = vcombine.low %v391_v24, %v393_v29  ;;  %v409_v50 = vmax.f32 %v401_v36, 0.0  ;;  %v411_v51 = vmax.f32 %v403_v37, 0.0 }
  0x34   :  { %v413_v52 = vmax.f32 %v405_v38, 0.0  ;;  %v474_v53 = vcombine.low %v395_v34, %v397_v35  ;;  %v446_v54 = vrot.slane %v436_v45, %v445_v41  ;;  %v460_v55 = vrot.slane %v438_v47, %v445_v41 }
  0x35   :  { %v473_v56 = vcombine.high %v391_v24, %v393_v29  ;;  %v475_v57 = vcombine.high %v395_v34, %v397_v35  ;;  %v453_v58 = vrot.slane %v437_v46, %v445_v41  ;;  %v467_v59 = vrot.slane %v439_v48, %v445_v41 }
  0x36   :  { %v482_v60 = vrot.slane %v472_v49, %v445_v41  ;;  %v496_v61 = vrot.slane %v474_v53, %v445_v41  ;;  %v418_v62 = vmin.f32 %v410_v40, 1.0  ;;  %v420_v63 = vmin.f32 %v412_v42, 1.0 }
  0x37   :  { %v532_v0 = vcombine.low %v414_v43, %v416_v44  ;;  %v415_v1 = vmin.f32 %v407_v39, 1.0  ;;  %v417_v2 = vmin.f32 %v409_v50, 1.0  ;;  %v419_v3 = vmin.f32 %v411_v51, 1.0 }
  0x38   :  { %v421_v4 = vmin.f32 %v413_v52, 1.0  ;;  %vm427_vm0 = vcmp.lt.s32.totalorder %v913_v21, 2  ;;  %v468_v5 = vcombine.low %v446_v54, %v460_v55  ;;  %v917_v6 = vrot.slane %v473_v56, %v445_v41 }
  0x39   :  { %v503_v7 = vrot.slane %v475_v57, %v445_v41  ;;  %v469_v8 = vcombine.high %v446_v54, %v460_v55  ;;  %v470_v9 = vcombine.low %v453_v58, %v467_v59  ;;  %v471_v10 = vcombine.high %v453_v58, %v467_v59 }
  0x3a   :  { %v504_v11 = vcombine.low %v482_v60, %v496_v61  ;;  %v533_v12 = vcombine.high %v414_v43, %v416_v44  ;;  %v534_v13 = vcombine.low %v418_v62, %v420_v63  ;;  %v535_v14 = vcombine.high %v418_v62, %v420_v63 }
  0x3b   :  { %v542_v15 = vrot.slane %v532_v0, %v445_v41  ;;  %v568_v16 = vcombine.low %v415_v1, %v417_v2  ;;  %v569_v17 = vcombine.high %v415_v1, %v417_v2  ;;  %v570_v18 = vcombine.low %v419_v3, %v421_v4 }
  0x3c   :  { %v571_v19 = vcombine.high %v419_v3, %v421_v4  ;;  %v516_v20 = vsel %vm427_vm0, %v468_v5, 0.0  ;;  %v549_v22 = vrot.slane %v533_v12, %v445_v41  ;;  %v556_v23 = vrot.slane %v534_v13, %v445_v41 }
  0x3d   :  { %v563_v24 = vrot.slane %v535_v14, %v445_v41  ;;  %v517_v25 = vsel %vm427_vm0, %v469_v8, 0.0  ;;  %v518_v26 = vsel %vm427_vm0, %v470_v9, 0.0  ;;  %v578_v27 = vrot.slane %v568_v16, %v445_v41 }
  0x3e   :  { %v592_v28 = vrot.slane %v570_v18, %v445_v41  ;;  %v564_v29 = vcombine.low %v542_v15, %v556_v23  ;;  %v565_v30 = vcombine.high %v542_v15, %v556_v23  ;;  %v519_v33 = vsel %vm427_vm0, %v471_v10, 0.0 }
  0x3f   :  { %v566_v31 = vcombine.low %v549_v22, %v563_v24  ;;  %v567_v32 = vcombine.high %v549_v22, %v563_v24  ;;  %v585_v34 = vrot.slane %v569_v17, %v445_v41  ;;  %v599_v35 = vrot.slane %v571_v19, %v445_v41 }
  0x40   :  { %v600_v36 = vcombine.low %v578_v27, %v592_v28  ;;  %v612_v37 = vsel %vm427_vm0, %v564_v29, 0.0  ;;  %v613_v38 = vsel %vm427_vm0, %v565_v30, 0.0  ;;  %v505_v42 = vcombine.high %v482_v60, %v496_v61 }
  0x41   :  { %v614_v39 = vsel %vm427_vm0, %v566_v31, 0.0  ;;  %v615_v40 = vsel %vm427_vm0, %v567_v32, 0.0  ;;  %v601_v43 = vcombine.high %v578_v27, %v592_v28  ;;  %v506_v44 = vcombine.low %v917_v6, %v503_v7 }
  0x42   :  { %v620_v45 = vmul.f32 %v612_v37, %v516_v20  ;;  %v621_v46 = vmul.f32 %v613_v38, %v517_v25  ;;  %v622_v41 = vmul.f32 %v614_v39, %v518_v26  ;;  %v520_v47 = vsel %vm427_vm0, %v504_v11, 0.0 }
  0x43   :  { %v602_v48 = vcombine.low %v585_v34, %v599_v35  ;;  %v616_v49 = vsel %vm427_vm0, %v600_v36, 0.0  ;;  %v623_v50 = vmul.f32 %v615_v40, %v519_v33  ;;  %v628_v52 = vadd.f32 %v612_v37, %v516_v20 }
  0x44   :  { %v708_v51 = vadd.f32 %v621_v46, %v620_v45  ;;  %v629_v53 = vadd.f32 %v613_v38, %v517_v25  ;;  %v630_v54 = vadd.f32 %v614_v39, %v518_v26  ;;  %v507_v55 = vcombine.high %v917_v6, %v503_v7 }
  0x45   :  { %v521_v56 = vsel %vm427_vm0, %v505_v42, 0.0  ;;  %v603_v57 = vcombine.high %v585_v34, %v599_v35  ;;  %v617_v58 = vsel %vm427_vm0, %v601_v43, 0.0  ;;  %v624_v59 = vmul.f32 %v616_v49, %v520_v47 }
  0x46   :  { %v709_v60 = vadd.f32 %v708_v51, %v622_v41  ;;  %v631_v61 = vadd.f32 %v615_v40, %v519_v33  ;;  %v734_v62 = vadd.f32 %v629_v53, %v628_v52  ;;  %v522_v63 = vsel %vm427_vm0, %v506_v44, 0.0 }
  0x47   :  { %v618_v0 = vsel %vm427_vm0, %v602_v48, 0.0  ;;  %v625_v1 = vmul.f32 %v617_v58, %v521_v56  ;;  %v632_v3 = vadd.f32 %v616_v49, %v520_v47  ;;  %v523_v5 = vsel %vm427_vm0, %v507_v55, 0.0 }
  0x48   :  { %v710_v2 = vadd.f32 %v709_v60, %v623_v50  ;;  %v735_v4 = vadd.f32 %v734_v62, %v630_v54  ;;  %v619_v6 = vsel %vm427_vm0, %v603_v57, 0.0  ;;  %v626_v7 = vmul.f32 %v618_v0, %v522_v63 }
  0x49   :  { %v633_v9 = vadd.f32 %v617_v58, %v521_v56  ;;  %v627_v11 = vmul.f32 %v619_v6, %v523_v5  ;;  %v634_v13 = vadd.f32 %v618_v0, %v522_v63  ;;  %v635_v16 = vadd.f32 %v619_v6, %v523_v5 }
  0x4a   :  { %v711_v8 = vadd.f32 %v710_v2, %v624_v59  ;;  %v736_v10 = vadd.f32 %v735_v4, %v631_v61 }
  0x4c   :  { %v712_v12 = vadd.f32 %v711_v8, %v625_v1  ;;  %v737_v14 = vadd.f32 %v736_v10, %v632_v3 }
  0x4e   :  { %v713_v15 = vadd.f32 %v712_v12, %v626_v7  ;;  %v738_v17 = vadd.f32 %v737_v14, %v633_v9 }
  0x50   :  { %v714_v18 = vadd.f32 %v713_v15, %v627_v11  ;;  %v739_v19 = vadd.f32 %v738_v17, %v634_v13 }
  0x52   :  { %715 = vadd.xlane.f32.xlu0 %v714_v18  ;;  %v740_v20 = vadd.f32 %v739_v19, %v635_v16 }
  0x56   :  { %741 = vadd.xlane.f32.xlu0 %v740_v20 }
  0xdf   :  { %v716_v22 = vpop.xlane.xlu0 %715 }
  0xe0   :  { %v717_v23 = vrot.slane %v716_v22, 4 }
  0xe2   :  { %v718_v21 = vadd.f32 %v717_v23, %v716_v22 }
  0xe3   :  { %v742_v24 = vpop.xlane.xlu0 %741 }
  0xe4   :  { %v719_v25 = vrot.slane %v718_v21, 2  ;;  %v743_v26 = vrot.slane %v742_v24, 4 }
  0xe6   :  { %v744_v27 = vadd.f32 %v743_v26, %v742_v24  ;;  %v720_v28 = vadd.f32 %v719_v25, %v718_v21 }
  0xe8   :  { %v745_v29 = vrot.slane %v744_v27, 2  ;;  %v721_v30 = vrot.slane %v720_v28, 1 }
  0xea   :  { %v746_v31 = vadd.f32 %v745_v29, %v744_v27  ;;  %v722_v32 = vadd.f32 %v721_v30, %v720_v28 }
  0xec   :  { %779 = vpush %v722_v32  ;;  %v747_v33 = vrot.slane %v746_v31, 1 }
  0xee   :  { %v748_v34 = vadd.f32 %v747_v33, %v746_v31 }
  0xf0   :  { %781 = vpush %v748_v34 }
 0x11d   :  { %s780_s1 = spop %779 }
 0x11e   :  { %725 = sst [smem:[#allocation9]] %s780_s1 }
 0x11f   :  { %843 = shalt.err (!%p840_p4)
}
 0x120   :  { %s867_s19 = smov [#allocation9]   ;;  %s844_s25 = scalar_lea.hbm %s980_s3, 16 }
 0x121   :  { %759 = dma.smem_to_hbm %s867_s19, 16, %s979_s2, [#allocation6]  }
 0x122   :  { %s782_s22 = spop %781  ;;  %p845_p5 = scmp.ne.s32.totalorder %s980_s3, %s844_s25 }
 0x123   :  { %751 = sst [smem:[#allocation10]] %s782_s22  ;;  %p848_p6 = scmp.lt.u32.totalorder %s844_s25, %s980_s3 }
 0x125   :  { %p850_p7 = pnand %p848_p6, %p845_p5 }
 0x127   :  { %853 = shalt.err (!%p850_p7)
}
 0x128   :  { %s868_s30 = smov [#allocation10]  }
 0x129   :  { %767 = dma.smem_to_hbm %s868_s30, 16, %s980_s3, [#allocation11]  }
 0x12a   :  { %858 = dma.done.wait [#allocation6], 16  }
 0x12b   :  { %859 = vsyncadd [#allocation6], 4294967280 }
 0x12c   :  { %860 = dma.done.wait [#allocation11], 16  }
 0x12d   :  { %861 = vsyncadd [#allocation11], 4294967280 }
 0x12e   :  { %774 = sfence }
 0x12f   :  { %775 = vsyncpa [#allocation5], 1 }
 0x130   :  { %776 = vsyncpa [#allocation8], 1 }
 0x131   :  { %777 = vsyncpa [#allocation6], 1 }
 0x132   :  { %778 = vsyncpa [#allocation11], 1 }

</bundles_post_ra>
